<compile_context>
chip_gen: v6e
topology: v6e:2x2x1
jax: 0.10.0
libtpu: 0.0.40
codegen_flags: <defaults>
</compile_context>

<pallas_src>
import jax
import jax.numpy as jnp
from jax import lax
from jax.experimental import pallas as pl
from jax.experimental.pallas import tpu as pltpu


_MASK_VALUE = 1.0e30   # finite "+inf" for padded-channel columns (far from f32 max)


def _round_up(x, m):
    return ((x + m - 1) // m) * m


def _vmem_capacity_bytes():
    """Physical VMEM of the attached TPU; conservative 64 MiB (v7x) fallback."""
    try:
        return int(pltpu.get_tpu_info().vmem_capacity_bytes)
    except Exception:
        return 64 * 1024 * 1024


_VMEM_CAPACITY = _vmem_capacity_bytes()
if _VMEM_CAPACITY >= 100 * 1024 * 1024:
    # v5e / v6e: 128 MiB physical VMEM -> large tiles are free.
    _VMEM_LIMIT_BYTES = 96 * 1024 * 1024
    _PASS2_BLOCK_BUDGET = 48 * 1024 * 1024
    _TILE_N_CAP = 6144
    _FUSED_BUDGET_BYTES = 80 * 1024 * 1024
else:
    # v7x: 64 MiB physical VMEM per TensorCore -> stay well under.
    _VMEM_LIMIT_BYTES = 48 * 1024 * 1024
    _PASS2_BLOCK_BUDGET = 24 * 1024 * 1024
    _TILE_N_CAP = 2048
    _FUSED_BUDGET_BYTES = 40 * 1024 * 1024


def _pick_spatial_tiling(n, c_pad):
    """Large lane-dense spatial tile with bounded (<~6%) zero-padding waste."""
    n128 = _round_up(n, 128)
    # pass-2 residency: (x in + out) * 2 pipeline buffers * c_pad * tile_n * 4 B
    max_tile = max(128, (_PASS2_BLOCK_BUDGET // (4 * 4 * c_pad)) // 128 * 128)
    cap = min(n128, max_tile, _TILE_N_CAP)
    allowed_pad = max(128, n128 // 16)
    tile_n = 128                      # always divides n128 (zero padding)
    for t in range(cap, 127, -128):
        if _round_up(n128, t) - n128 <= allowed_pad:
            tile_n = t
            break
    n_pad = _round_up(n128, tile_n)
    return tile_n, n_pad


def _masked_softmax_neg(energy, c, c_pad):
    """attention = softmax(rowmax(E) - E) == softmax(-E), padded cols zeroed."""
    if c_pad != c:
        col = lax.broadcasted_iota(jnp.int32, (c_pad, c_pad), 1)
        energy = jnp.where(col < c, energy, _MASK_VALUE)
    # single row-min reduction gives non-positive exponents (same semantics
    # as the PyTorch rowmax-minus-E softmax).
    row_min = jnp.min(energy, axis=-1, keepdims=True)
    p = jnp.exp(row_min - energy)              # padded cols -> exp(-huge) = 0
    denom = jnp.sum(p, axis=-1, keepdims=True)
    return p / denom


# ----------------------------- fused path -----------------------------------
def _make_fused_kernel(c, c_pad):
    def kernel(gamma_ref, x_ref, o_ref):
        x = x_ref[0]                                   # (c_pad, n_pad) f32, VMEM
        xb = x.astype(jnp.bfloat16)
        # Gram matrix: contract the lane (N) axis of both operands -> (C, C).
        energy = lax.dot_general(xb, xb, (((1,), (1,)), ((), ())),
                                 preferred_element_type=jnp.float32)
        attn = _masked_softmax_neg(energy, c, c_pad).astype(jnp.bfloat16)
        out = jnp.dot(attn, xb, preferred_element_type=jnp.float32)
        o_ref[0] = gamma_ref[0] * out + x
    return kernel


# --------------------------- two-pass fallback -------------------------------
def _make_energy_softmax_kernel(c, c_pad):
    def kernel(x_ref, attn_ref, e_acc):
        k = pl.program_id(1)

        @pl.when(k == 0)
        def _init():
            e_acc[...] = jnp.zeros_like(e_acc)

        xb = x_ref[0].astype(jnp.bfloat16)             # (c_pad, tile_n)
        e_acc[...] += lax.dot_general(
            xb, xb, (((1,), (1,)), ((), ())),
            preferred_element_type=jnp.float32)

        @pl.when(k == pl.num_programs(1) - 1)
        def _finalize():
            attn = _masked_softmax_neg(e_acc[...], c, c_pad)
            attn_ref[0] = attn.astype(attn_ref.dtype)  # bf16 HBM write

    return kernel


def _apply_attention_kernel(gamma_ref, attn_ref, x_ref, o_ref):
    # attn: (c_pad, c_pad) bf16, x/o: (c_pad, tile_n) f32; residual stays f32.
    x = x_ref[0]
    out = jnp.dot(attn_ref[0], x.astype(jnp.bfloat16),
                  preferred_element_type=jnp.float32)
    o_ref[0] = gamma_ref[0] * out + x


# ------------------------------- wrapper -------------------------------------
@jax.jit
def cam_module_forward(x, gamma):
    """x: (B, C, H, W) float32, gamma: (1,) float32. Returns (B, C, H, W) float32."""
    B, C, H, W = x.shape
    N = H * W
    c_pad = _round_up(C, 128)          # lane-dense attention + full MXU contraction
    n128 = _round_up(N, 128)
    xf = x.reshape(B, C, N)

    # Fused-path feasibility: ~4x slab pipeline buffers + ~2.5x slab temporaries
    # + the (C, C) energy/attention intermediates.
    slab_bytes = 4 * c_pad * n128
    fused_ok = 7 * slab_bytes + 8 * c_pad * c_pad <= _FUSED_BUDGET_BYTES

    if fused_ok:
        n_pad = n128
        if (c_pad, n_pad) != (C, N):
            xf = jnp.pad(xf, ((0, 0), (0, c_pad - C), (0, n_pad - N)))
        out_flat = pl.pallas_call(
            _make_fused_kernel(C, c_pad),
            out_shape=jax.ShapeDtypeStruct((B, c_pad, n_pad), jnp.float32),
            grid_spec=pltpu.PrefetchScalarGridSpec(
                num_scalar_prefetch=0,
                grid=(B,),
                in_specs=[
                    pl.BlockSpec(memory_space=pltpu.MemorySpace.SMEM),        # gamma
                    pl.BlockSpec((1, c_pad, n_pad), lambda b: (b, 0, 0)),     # x slab
                ],
                out_specs=pl.BlockSpec((1, c_pad, n_pad), lambda b: (b, 0, 0)),
            ),
            compiler_params=pltpu.CompilerParams(
                dimension_semantics=("parallel",),
                vmem_limit_bytes=_VMEM_LIMIT_BYTES,
            ),
        )(gamma, xf)
        return out_flat[:, :C, :N].reshape(B, C, H, W)

    # ---- two-pass fallback (slab does not fit VMEM) -------------------------
    tile_n, n_pad = _pick_spatial_tiling(N, c_pad)
    num_nt = n_pad // tile_n
    if (c_pad, n_pad) != (C, N):
        xf = jnp.pad(xf, ((0, 0), (0, c_pad - C), (0, n_pad - N)))

    # pass 1: attention = softmax(-(X @ X^T)) per batch, written as bf16.
    attn = pl.pallas_call(
        _make_energy_softmax_kernel(C, c_pad),
        out_shape=jax.ShapeDtypeStruct((B, c_pad, c_pad), jnp.bfloat16),
        grid_spec=pltpu.PrefetchScalarGridSpec(
            num_scalar_prefetch=0,
            grid=(B, num_nt),                          # reduction (N-tile) axis last
            in_specs=[
                pl.BlockSpec((1, c_pad, tile_n), lambda b, k: (b, 0, k)),
            ],
            out_specs=pl.BlockSpec((1, c_pad, c_pad), lambda b, k: (b, 0, 0)),
            scratch_shapes=[pltpu.VMEM((c_pad, c_pad), jnp.float32)],
        ),
        compiler_params=pltpu.CompilerParams(
            dimension_semantics=("parallel", "arbitrary"),
            vmem_limit_bytes=_VMEM_LIMIT_BYTES,
        ),
    )(xf)

    # pass 2: out = gamma * (attention @ X) + X, N-tiled (no aliasing: avoids
    # a defensive copy of X when no padding was needed).
    out_flat = pl.pallas_call(
        _apply_attention_kernel,
        out_shape=jax.ShapeDtypeStruct((B, c_pad, n_pad), jnp.float32),
        grid_spec=pltpu.PrefetchScalarGridSpec(
            num_scalar_prefetch=0,
            grid=(B, num_nt),
            in_specs=[
                pl.BlockSpec(memory_space=pltpu.MemorySpace.SMEM),            # gamma
                pl.BlockSpec((1, c_pad, c_pad), lambda b, j: (b, 0, 0)),      # attention
                pl.BlockSpec((1, c_pad, tile_n), lambda b, j: (b, 0, j)),     # x tile
            ],
            out_specs=pl.BlockSpec((1, c_pad, tile_n), lambda b, j: (b, 0, j)),
        ),
        compiler_params=pltpu.CompilerParams(
            dimension_semantics=("parallel", "parallel"),
            vmem_limit_bytes=_VMEM_LIMIT_BYTES,
        ),
    )(gamma, attn, xf)

    return out_flat[:, :C, :N].reshape(B, C, H, W)


def cam_module_ref(x, gamma):
    """Pure-JAX f32 reference mirroring the PyTorch forward."""
    B, C, H, W = x.shape
    xf = x.reshape(B, C, H * W)
    energy = jnp.einsum("bcn,bdn->bcd", xf, xf, precision=lax.Precision.HIGHEST)
    energy_new = jnp.max(energy, axis=-1, keepdims=True) - energy
    attention = jax.nn.softmax(energy_new, axis=-1)
    out = jnp.einsum("bcd,bdn->bcn", attention, xf,
                     precision=lax.Precision.HIGHEST).reshape(B, C, H, W)
    return gamma[0] * out + x


if __name__ == "__main__":
    key = jax.random.PRNGKey(0)
    B, C, H, W = 2, 4, 16, 16
    x = jax.random.normal(key, (B, C, H, W), dtype=jnp.float32)

    # PyTorch init is gamma = zeros(1); also use a nonzero gamma so the
    # attention path is actually exercised.
    gamma_zero = jnp.zeros((1,), dtype=jnp.float32)
    gamma_test = jnp.array([0.5], dtype=jnp.float32)

    out0 = jax.block_until_ready(cam_module_forward(x, gamma_zero))
    out1 = jax.block_until_ready(cam_module_forward(x, gamma_test))

    ref0 = cam_module_ref(x, gamma_zero)
    ref1 = cam_module_ref(x, gamma_test)

    # bf16 MXU operands round the Gram-matrix softmax logits and the stored
    # attention weights; tolerance reflects that vs an all-f32 reference.
    assert jnp.allclose(out0, ref0, atol=5e-2, rtol=5e-2)
    assert jnp.allclose(out1, ref1, atol=5e-2, rtol=5e-2)

    print("KERNEL_OK")
</pallas_src>

<mosaic_0001>
module attributes {stable_mosaic.version = 11 : i64} {
  func.func @kernel(%arg0: i32, %arg1: memref<1xf32, #tpu.memory_space<smem>>, %arg2: memref<1x128x256xf32, #tpu.memory_space<vmem>>, %arg3: memref<1x128x256xf32, #tpu.memory_space<vmem>>) attributes {dimension_semantics = [#tpu.dimension_semantics<parallel>], iteration_bounds = array<i64: 2>, scalar_prefetch = 0 : i64, scratch_operands = 0 : i64, tpu.core_type = #tpu.core_type<tc>, window_params = [{transform_indices = @transform_0, window_bounds = array<i64: 1>}, {transform_indices = @transform_1, window_bounds = array<i64: 1, 128, 256>}, {transform_indices = @transform_2, window_bounds = array<i64: 1, 128, 256>}]} {
    %c0 = arith.constant 0 : index
    %c0_0 = arith.constant 0 : index
    %c0_1 = arith.constant 0 : index
    %0 = vector.load %arg2[%c0, %c0_0, %c0_1] : memref<1x128x256xf32, #tpu.memory_space<vmem>>, vector<1x128x256xf32>
    %1 = vector.shape_cast %0 : vector<1x128x256xf32> to vector<128x256xf32>
    %2 = arith.truncf %1 : vector<128x256xf32> to vector<128x256xbf16>
    %cst = arith.constant dense<0.000000e+00> : vector<128x128xf32>
    %3 = tpu.matmul %2, %2, %cst {dimension_numbers = #tpu.dot_dimension_numbers<[1], [1], [0], [0], [0, 0, 1, 0], [], []>} : vector<128x256xbf16>, vector<128x256xbf16>, vector<128x128xf32> -> vector<128x128xf32>
    %4 = tpu.iota {dimensions = array<i32: 1>} : vector<128x128xi32>
    %c4_i32 = arith.constant 4 : i32
    %5 = vector.broadcast %c4_i32 : i32 to vector<128x128xi32>
    %6 = arith.cmpi slt, %4, %5 : vector<128x128xi32>
    %cst_2 = arith.constant 1.000000e+30 : f32
    %7 = vector.broadcast %cst_2 : f32 to vector<128x128xf32>
    %8 = arith.select %6, %3, %7 : vector<128x128xi1>, vector<128x128xf32>
    %cst_3 = arith.constant dense<0x7F800000> : vector<128xf32>
    %9 = vector.multi_reduction <minimumf>, %8, %cst_3 [1] : vector<128x128xf32> to vector<128xf32>
    %10 = vector.shape_cast %9 : vector<128xf32> to vector<128x1xf32>
    %11 = vector.broadcast %10 : vector<128x1xf32> to vector<128x128xf32>
    %12 = arith.subf %11, %8 : vector<128x128xf32>
    %13 = math.exp %12 : vector<128x128xf32>
    %cst_4 = arith.constant dense<0.000000e+00> : vector<128xf32>
    %14 = vector.multi_reduction <add>, %13, %cst_4 [1] : vector<128x128xf32> to vector<128xf32>
    %15 = vector.shape_cast %14 : vector<128xf32> to vector<128x1xf32>
    %16 = vector.broadcast %15 : vector<128x1xf32> to vector<128x128xf32>
    %17 = arith.divf %13, %16 : vector<128x128xf32>
    %18 = arith.truncf %17 : vector<128x128xf32> to vector<128x128xbf16>
    %cst_5 = arith.constant dense<0.000000e+00> : vector<128x256xf32>
    %19 = tpu.matmul %18, %2, %cst_5 {dimension_numbers = #tpu.dot_dimension_numbers<[1], [0], [0], [1], [0, 0, 1, 1], [], []>} : vector<128x128xbf16>, vector<128x256xbf16>, vector<128x256xf32> -> vector<128x256xf32>
    %c0_6 = arith.constant 0 : index
    %20 = memref.load %arg1[%c0_6] : memref<1xf32, #tpu.memory_space<smem>>
    %21 = vector.broadcast %20 : f32 to vector<128x256xf32>
    %22 = arith.mulf %21, %19 : vector<128x256xf32>
    %23 = arith.addf %22, %1 : vector<128x256xf32>
    %c0_7 = arith.constant 0 : index
    %c0_8 = arith.constant 0 : index
    %c0_9 = arith.constant 0 : index
    %24 = vector.load %arg3[%c0_7, %c0_8, %c0_9] : memref<1x128x256xf32, #tpu.memory_space<vmem>>, vector<1x128x256xf32>
    %25 = vector.shape_cast %24 : vector<1x128x256xf32> to vector<128x256xf32>
    %26 = vector.shape_cast %23 : vector<128x256xf32> to vector<1x128x256xf32>
    tpu.vector_store %arg3[%c0_7, %c0_8, %c0_9], %26 {strides = array<i32>} : memref<1x128x256xf32, #tpu.memory_space<vmem>>, vector<1x128x256xf32>,
    return
  }
  func.func @transform_0(%arg0: i32) -> i32 {
    %c0_i32 = arith.constant 0 : i32
    %c0_i32_0 = arith.constant 0 : i32
    return %c0_i32 : i32
  }
  func.func @transform_1(%arg0: i32) -> (i32, i32, i32) {
    %c0_i32 = arith.constant 0 : i32
    %c0_i32_0 = arith.constant 0 : i32
    %c0_i32_1 = arith.constant 0 : i32
    return %arg0, %c0_i32, %c0_i32_0 : i32, i32, i32
  }
  func.func @transform_2(%arg0: i32) -> (i32, i32, i32) {
    %c0_i32 = arith.constant 0 : i32
    %c0_i32_0 = arith.constant 0 : i32
    %c0_i32_1 = arith.constant 0 : i32
    return %arg0, %c0_i32, %c0_i32_0 : i32, i32, i32
  }
}

</mosaic_0001>

<bundles_post_ra>
// kernel: cam_module_forward.1
= control target key start
LH: loop header
LB: loop body
LE: loop exit
PB: predicated region body
PF: predicated region fallthrough
CT: control target
= control target key end

     0   :  { %s841_s11 = smov 0   ;;  %s1291_s0 = inlined_call_operand.<no memory space> [shape: f32[1], index: 0, kind: input, shape index: {}]   ;;  %s1292_s1 = inlined_call_operand.vmem [shape: f32[2,128,256], index: 1, kind: input, shape index: {}]   ;;  %s1293_s2 = inlined_call_operand.vmem [shape: f32[2,128,256], index: 2, kind: output, shape index: {}]  }
   0x1   :  { %7 = sst [smem:[#allocation2]] %s1291_s0 }
   0x2 LB: > { %s728_s12 = sadd.s32 4294967295, %s820_s11   ;;  %p732_p0 = scmp.ge.s32.totalorder %s820_s11, 1  ;;  %s820_s11 = sphi %s841_s11, %s13_s11  }
   0x3   : > { %p113_p1 = scmp.lt.s32.totalorder %s820_s11, 3 }
   0x5   : > { %p114_p2 = pnand %p732_p0, %p113_p1 }
   0x6   : > { %p135_p3 = scmp.lt.s32.totalorder (!%p114_p2), %s728_s12, 1  ;;  %s575_s16 = sld [smem:[#allocation2]] (!%p114_p2) }
   0x7   : > { %117 = sbr.rel (%p114_p2) target bundleno = 852 (0x354), region = 28 }
   0xc   : > { %s1295_s12 = smov (!%p135_p3, %s728_s12), 1  ;;  %v291_v48 = vlaneseq }
   0xd   : > { %s739_s0 = sshll.u32 %s1295_s12, 8 }
   0xe   : > { %s857_s15 = scalar_lea.vmem %s1292_s1, %s739_s0  ;;  %v1012_v49 = vand.u32 127, %v291_v48  ;;  %s1191_s19 = scalar_lea.vmem %s1293_s2, %s739_s0 }
   0xf   : > { %v860_v0 = vld [vmem:[%s857_s15 + $0xe8] sm:$0xff]  ;;  %v863_v1 = vld [vmem:[%s857_s15 + $0xf8] sm:$0xff]  ;;  %v866_v2 = vld [vmem:[%s857_s15 + $0xe0] sm:$0xff] }
  0x10   : > { %v870_v3 = vpack.c.bf16 %v863_v1, %v860_v0  ;;  %v873_v4 = vld [vmem:[%s857_s15 + $0xf0] sm:$0xff]  ;;  %v876_v5 = vld [vmem:[%s857_s15 + $0xc8] sm:$0xff]  ;;  %v879_v6 = vld [vmem:[%s857_s15 + $0xd8] sm:$0xff]  ;;  %vm293_vm0 = vcmp.lt.s32.totalorder %v1012_v49, 4 }
  0x11   : > { %v883_v7 = vpack.c.bf16 %v873_v4, %v866_v2  ;;  %v887_v8 = vpack.c.bf16 %v879_v6, %v876_v5  ;;  %v891_v9 = vld [vmem:[%s857_s15 + $0xc0] sm:$0xff]  ;;  %v894_v10 = vld [vmem:[%s857_s15 + $0xd0] sm:$0xff]  ;;  %v899_v11 = vld [vmem:[%s857_s15 + $0xa8] sm:$0xff] }
  0x12   : > { %194 = vmatprep.subr.bf16.mxu0 %v870_v3  ;;  %462 = vmatprep.subr.bf16.mxu1 %v870_v3  ;;  %v902_v12 = vld [vmem:[%s857_s15 + $0xb8] sm:$0xff]  ;;  %v909_v13 = vpack.c.bf16 %v894_v10, %v891_v9  ;;  %v916_v15 = vld [vmem:[%s857_s15 + $0xa0] sm:$0xff]  ;;  %v919_v16 = vld [vmem:[%s857_s15 + $0xb0] sm:$0xff] }
  0x13   : > { %195 = vmatpush1.bf16.xpose.msra.mxu0 %v883_v7  ;;  %463 = vmatpush1.bf16.msra.mxu1 %v883_v7  ;;  %v913_v14 = vpack.c.bf16 %v902_v12, %v899_v11  ;;  %v922_v17 = vld [vmem:[%s857_s15 + $0x88] sm:$0xff]  ;;  %v926_v18 = vld [vmem:[%s857_s15 + $0x98] sm:$0xff]  ;;  %v188_v22 = vpack.c.bf16 %v919_v16, %v916_v15  ;;  %v943_v24 = vld [vmem:[%s857_s15 + $0x80] sm:$0xff] }
  0x14   : > { %196 = vmatprep.subr.bf16.mxu0 %v887_v8  ;;  %464 = vmatprep.subr.bf16.mxu1 %v887_v8  ;;  %v929_v19 = vld [vmem:[%s857_s15 + $0x8] sm:$0xff]  ;;  %v932_v20 = vld [vmem:[%s857_s15 + $0x18] sm:$0xff]  ;;  %v187_v23 = vpack.c.bf16 %v926_v18, %v922_v17  ;;  %v946_v25 = vld [vmem:[%s857_s15 + $0x90] sm:$0xff] }
  0x15   : > { %v179_v21 = vpack.c.bf16 %v932_v20, %v929_v19  ;;  %v950_v26 = vld [vmem:[%s857_s15 + $0x68] sm:$0xff]  ;;  %v953_v27 = vld [vmem:[%s857_s15 + $0x78] sm:$0xff]  ;;  %v186_v28 = vpack.c.bf16 %v946_v25, %v943_v24  ;;  %v960_v30 = vld [vmem:[%s857_s15 + $0x60] sm:$0xff] }
  0x16   : > { %v185_v29 = vpack.c.bf16 %v953_v27, %v950_v26  ;;  %v963_v31 = vld [vmem:[%s857_s15 + $0x70] sm:$0xff]  ;;  %v966_v32 = vld [vmem:[%s857_s15 + $0x48] sm:$0xff]  ;;  %v969_v33 = vld [vmem:[%s857_s15 + $0x58] sm:$0xff] }
  0x17   : > { %465 = vmatpush1.bf16.msra.mxu1 %v909_v13  ;;  %226 = vmatprep.mubr.bf16.mxu0 %v179_v21  ;;  %v184_v34 = vpack.c.bf16 %v963_v31, %v960_v30  ;;  %v183_v35 = vpack.c.bf16 %v969_v33, %v966_v32  ;;  %v976_v36 = vld [vmem:[%s857_s15 + $0x40] sm:$0xff]  ;;  %v979_v37 = vld [vmem:[%s857_s15 + $0x50] sm:$0xff]  ;;  %v982_v38 = vld [vmem:[%s857_s15 + $0x28] sm:$0xff] }
  0x18   : > { %466 = vmatprep.subr.bf16.mxu1 %v913_v14  ;;  %v985_v39 = vld [vmem:[%s857_s15 + $0x38] sm:$0xff]  ;;  %v182_v40 = vpack.c.bf16 %v979_v37, %v976_v36  ;;  %v992_v42 = vld [vmem:[%s857_s15 + $0x20] sm:$0xff]  ;;  %v995_v43 = vld [vmem:[%s857_s15 + $0x30] sm:$0xff] }
  0x19   : > { %v181_v41 = vpack.c.bf16 %v985_v39, %v982_v38  ;;  %v180_v44 = vpack.c.bf16 %v995_v43, %v992_v42  ;;  %v1000_v45 = vld [vmem:[%s857_s15] sm:$0xff]  ;;  %v1003_v46 = vld [vmem:[%s857_s15 + $0x10] sm:$0xff] }
  0x1a   : > { %v178_v47 = vpack.c.bf16 %v1003_v46, %v1000_v45 }
  0x1b   : > { %197 = vmatpush1.bf16.xpose.msra.mxu0 %v909_v13  ;;  %467 = vmatpush1.bf16.msra.mxu1 %v188_v22 }
  0x1c   : > { %198 = vmatprep.subr.bf16.mxu0 %v913_v14  ;;  %468 = vmatprep.subr.bf16.mxu1 %v187_v23 }
  0x1f   : > { %469 = vmatpush1.bf16.msra.mxu1 %v186_v28 }
  0x20   : > { %470 = vmatprep.subr.bf16.mxu1 %v185_v29 }
  0x23   : > { %199 = vmatpush1.bf16.xpose.msra.mxu0 %v188_v22  ;;  %471 = vmatpush1.bf16.msra.mxu1 %v184_v34 }
  0x24   : > { %200 = vmatprep.subr.bf16.mxu0 %v187_v23  ;;  %472 = vmatprep.subr.bf16.mxu1 %v183_v35 }
  0x27   : > { %473 = vmatpush1.bf16.msra.mxu1 %v182_v40 }
  0x28   : > { %474 = vmatprep.subr.bf16.mxu1 %v181_v41 }
  0x2b   : > { %201 = vmatpush1.bf16.xpose.msra.mxu0 %v186_v28  ;;  %475 = vmatpush1.bf16.msra.mxu1 %v180_v44 }
  0x2c   : > { %202 = vmatprep.subr.bf16.mxu0 %v185_v29  ;;  %476 = vmatprep.subr.bf16.mxu1 %v179_v21 }
  0x2f   : > { %477 = vmatpush1.bf16.msra.mxu1 %v178_v47 }
  0x33   : > { %203 = vmatpush1.bf16.xpose.msra.mxu0 %v184_v34 }
  0x34   : > { %204 = vmatprep.subr.bf16.mxu0 %v183_v35 }
  0x3b   : > { %205 = vmatpush1.bf16.xpose.msra.mxu0 %v182_v40 }
  0x3c   : > { %206 = vmatprep.subr.bf16.mxu0 %v181_v41 }
  0x43   : > { %207 = vmatpush1.bf16.xpose.msra.mxu0 %v180_v44 }
  0x44   : > { %208 = vmatprep.subr.bf16.mxu0 %v179_v21 }
  0x4b   : > { %209 = vmatpush1.bf16.xpose.msra.mxu0 %v178_v47 }
  0x52   : > { %227 = vmatmul.mubr.bf16.vlgmr.msra.gmra.mxu0 %v178_v47 }
  0x53   : > { %234 = vmatprep.mubr.bf16.mxu0 %v181_v41 }
  0x5a   : > { %235 = vmatmul.mubr.bf16.gmra.mxu0 %v180_v44 }
  0x5b   : > { %242 = vmatprep.mubr.bf16.mxu0 %v183_v35 }
  0x62   : > { %243 = vmatmul.mubr.bf16.gmra.mxu0 %v182_v40 }
  0x63   : > { %250 = vmatprep.mubr.bf16.mxu0 %v185_v29 }
  0x6a   : > { %251 = vmatmul.mubr.bf16.gmra.mxu0 %v184_v34 }
  0x6b   : > { %258 = vmatprep.mubr.bf16.mxu0 %v187_v23 }
  0x72   : > { %259 = vmatmul.mubr.bf16.gmra.mxu0 %v186_v28 }
  0x73   : > { %266 = vmatprep.mubr.bf16.mxu0 %v913_v14 }
  0x7a   : > { %267 = vmatmul.mubr.bf16.gmra.mxu0 %v188_v22 }
  0x7b   : > { %274 = vmatprep.mubr.bf16.mxu0 %v887_v8 }
  0x82   : > { %275 = vmatmul.mubr.bf16.gmra.mxu0 %v909_v13 }
  0x83   : > { %282 = vmatprep.mubr.bf16.mxu0 %v870_v3 }
  0x8a   : > { %283 = vmatmul.mubr.bf16.gmra.mxu0 %v883_v7 }
 0x112   : > { %v228_v50 = vpop.f32.mrf.mxu0 }
 0x113   : > { %v1017_v51 = vsel %vm293_vm0, %v228_v50, 1e+30 }
 0x114   : > { %310 = vmin.xlane.f32.xlu0 %v1017_v51  ;;  %v230_v52 = vpop.f32.mrf.mxu0 }
 0x116   : > { %v231_v53 = vpop.f32.mrf.mxu0 }
 0x117   : > { %v1022_v54 = vsel %vm293_vm0, %v231_v53, 1e+30 }
 0x118   : > { %312 = vmin.xlane.f32.xlu0 %v1022_v54  ;;  %v233_v55 = vpop.f32.mrf.mxu0 }
 0x11a   : > { %v236_v56 = vpop.f32.mrf.mxu0 }
 0x11b   : > { %v1027_v57 = vsel %vm293_vm0, %v236_v56, 1e+30 }
 0x11c   : > { %314 = vmin.xlane.f32.xlu1 %v1027_v57  ;;  %v238_v58 = vpop.f32.mrf.mxu0 }
 0x11e   : > { %v239_v59 = vpop.f32.mrf.mxu0 }
 0x11f   : > { %v1032_v60 = vsel %vm293_vm0, %v239_v59, 1e+30 }
 0x120   : > { %316 = vmin.xlane.f32.xlu1 %v1032_v60  ;;  %v241_v61 = vpop.f32.mrf.mxu0 }
 0x122   : > { %v244_v62 = vpop.f32.mrf.mxu0 }
 0x123   : > { %v1037_v63 = vsel %vm293_vm0, %v244_v62, 1e+30 }
 0x124   : > { %318 = vmin.xlane.f32.xlu0 %v1037_v63  ;;  %v246_v3 = vpop.f32.mrf.mxu0 }
 0x126   : > { %v247_v7 = vpop.f32.mrf.mxu0 }
 0x127   : > { %v1042_v8 = vsel %vm293_vm0, %v247_v7, 1e+30 }
 0x128   : > { %320 = vmin.xlane.f32.xlu1 %v1042_v8  ;;  %v249_v13 = vpop.f32.mrf.mxu0 }
 0x12a   : > { %v252_v14 = vpop.f32.mrf.mxu0 }
 0x12b   : > { %v1047_v21 = vsel %vm293_vm0, %v252_v14, 1e+30 }
 0x12c   : > { %322 = vmin.xlane.f32.xlu0 %v1047_v21  ;;  %v254_v22 = vpop.f32.mrf.mxu0 }
 0x12e   : > { %v255_v23 = vpop.f32.mrf.mxu0 }
 0x12f   : > { %v1052_v28 = vsel %vm293_vm0, %v255_v23, 1e+30 }
 0x130   : > { %324 = vmin.xlane.f32.xlu1 %v1052_v28  ;;  %v257_v29 = vpop.f32.mrf.mxu0 }
 0x132   : > { %v260_v34 = vpop.f32.mrf.mxu0 }
 0x133   : > { %v1057_v35 = vsel %vm293_vm0, %v260_v34, 1e+30 }
 0x134   : > { %326 = vmin.xlane.f32.xlu0 %v1057_v35  ;;  %v262_v40 = vpop.f32.mrf.mxu0 }
 0x136   : > { %v263_v41 = vpop.f32.mrf.mxu0 }
 0x137   : > { %v1062_v44 = vsel %vm293_vm0, %v263_v41, 1e+30 }
 0x138   : > { %328 = vmin.xlane.f32.xlu1 %v1062_v44  ;;  %v265_v47 = vpop.f32.mrf.mxu0 }
 0x13a   : > { %v268_v48 = vpop.f32.mrf.mxu0 }
 0x13b   : > { %v1067_v50 = vsel %vm293_vm0, %v268_v48, 1e+30 }
 0x13c   : > { %330 = vmin.xlane.f32.xlu0 %v1067_v50  ;;  %v270_v52 = vpop.f32.mrf.mxu0 }
 0x13e   : > { %v271_v53 = vpop.f32.mrf.mxu0 }
 0x13f   : > { %v1072_v55 = vsel %vm293_vm0, %v271_v53, 1e+30 }
 0x140   : > { %332 = vmin.xlane.f32.xlu1 %v1072_v55  ;;  %v273_v56 = vpop.f32.mrf.mxu0 }
 0x142   : > { %v276_v58 = vpop.f32.mrf.mxu0 }
 0x143   : > { %v1077_v59 = vsel %vm293_vm0, %v276_v58, 1e+30 }
 0x144   : > { %334 = vmin.xlane.f32.xlu0 %v1077_v59  ;;  %v278_v61 = vpop.f32.mrf.mxu0 }
 0x146   : > { %v279_v62 = vpop.f32.mrf.mxu0 }
 0x147   : > { %v1082_v3 = vsel %vm293_vm0, %v279_v62, 1e+30 }
 0x148   : > { %336 = vmin.xlane.f32.xlu1 %v1082_v3  ;;  %v281_v7 = vpop.f32.mrf.mxu0 }
 0x14a   : > { %v284_v13 = vpop.f32.mrf.mxu0 }
 0x14b   : > { %v1087_v14 = vsel %vm293_vm0, %v284_v13, 1e+30 }
 0x14c   : > { %338 = vmin.xlane.f32.xlu0 %v1087_v14  ;;  %v286_v22 = vpop.f32.mrf.mxu0 }
 0x14e   : > { %v287_v23 = vpop.f32.mrf.mxu0 }
 0x14f   : > { %v1092_v29 = vsel %vm293_vm0, %v287_v23, 1e+30 }
 0x150   : > { %340 = vmin.xlane.f32.xlu1 %v1092_v29  ;;  %v289_v34 = vpop.f32.mrf.mxu0 }
 0x19d   : > { %v311_v40 = vpop.xlane.xlu0 %310 }
 0x19e   : > { %v342_v41 = vsub.f32 %v311_v40, %v1017_v51 }
 0x1a0   : > { %v358_v47 = vmul.f32 1.442695, %v342_v41 }
 0x1a1   : > { %v313_v48 = vpop.xlane.xlu0 %312 }
 0x1a2   : > { %750 = vpow2.f32 %v358_v47  ;;  %v343_v52 = vsub.f32 %v313_v48, %v1022_v54 }
 0x1a4   : > { %v360_v53 = vmul.f32 1.442695, %v343_v52 }
 0x1a5   : > { %v315_v56 = vpop.xlane.xlu1 %314 }
 0x1a6   : > { %752 = vpow2.f32 %v360_v53  ;;  %v344_v58 = vsub.f32 %v315_v56, %v1027_v57 }
 0x1a8   : > { %v362_v61 = vmul.f32 1.442695, %v344_v58 }
 0x1a9   : > { %v317_v49 = vpop.xlane.xlu1 %316 }
 0x1aa   : > { %754 = vpow2.f32 %v362_v61  ;;  %v345_v62 = vsub.f32 %v317_v49, %v1032_v60 }
 0x1ac   : > { %v364_v7 = vmul.f32 1.442695, %v345_v62 }
 0x1ad   : > { %v319_v13 = vpop.xlane.xlu0 %318 }
 0x1ae   : > { %756 = vpow2.f32 %v364_v7  ;;  %v346_v51 = vsub.f32 %v319_v13, %v1037_v63 }
 0x1af   : > { %v1100_v22 = vpop.eup %750 }
 0x1b0   : > { %v366_v23 = vmul.f32 1.442695, %v346_v51  ;;  %390 = vadd.xlane.f32.xlu0 %v1100_v22 }
 0x1b1   : > { %v321_v54 = vpop.xlane.xlu1 %320 }
 0x1b2   : > { %758 = vpow2.f32 %v366_v23  ;;  %v347_v34 = vsub.f32 %v321_v54, %v1042_v8 }
 0x1b3   : > { %v1104_v57 = vpop.eup %752 }
 0x1b4   : > { %v368_v40 = vmul.f32 1.442695, %v347_v34  ;;  %392 = vadd.xlane.f32.xlu1 %v1104_v57 }
 0x1b5   : > { %v323_v60 = vpop.xlane.xlu0 %322 }
 0x1b6   : > { %760 = vpow2.f32 %v368_v40  ;;  %v348_v41 = vsub.f32 %v323_v60, %v1047_v21 }
 0x1b7   : > { %v1108_v47 = vpop.eup %754 }
 0x1b8   : > { %v370_v63 = vmul.f32 1.442695, %v348_v41  ;;  %394 = vadd.xlane.f32.xlu0 %v1108_v47 }
 0x1b9   : > { %v325_v48 = vpop.xlane.xlu1 %324 }
 0x1ba   : > { %762 = vpow2.f32 %v370_v63  ;;  %v349_v52 = vsub.f32 %v325_v48, %v1052_v28 }
 0x1bb   : > { %v1112_v53 = vpop.eup %756 }
 0x1bc   : > { %v372_v8 = vmul.f32 1.442695, %v349_v52  ;;  %396 = vadd.xlane.f32.xlu1 %v1112_v53 }
 0x1bd   : > { %v327_v56 = vpop.xlane.xlu0 %326 }
 0x1be   : > { %764 = vpow2.f32 %v372_v8  ;;  %v350_v58 = vsub.f32 %v327_v56, %v1057_v35 }
 0x1bf   : > { %v1116_v61 = vpop.eup %758 }
 0x1c0   : > { %v374_v21 = vmul.f32 1.442695, %v350_v58  ;;  %398 = vadd.xlane.f32.xlu0 %v1116_v61 }
 0x1c1   : > { %v329_v49 = vpop.xlane.xlu1 %328 }
 0x1c2   : > { %766 = vpow2.f32 %v374_v21  ;;  %v351_v62 = vsub.f32 %v329_v49, %v1062_v44 }
 0x1c3   : > { %v1120_v7 = vpop.eup %760 }
 0x1c4   : > { %v376_v28 = vmul.f32 1.442695, %v351_v62  ;;  %400 = vadd.xlane.f32.xlu1 %v1120_v7 }
 0x1c5   : > { %v331_v13 = vpop.xlane.xlu0 %330 }
 0x1c6   : > { %768 = vpow2.f32 %v376_v28  ;;  %v352_v51 = vsub.f32 %v331_v13, %v1067_v50  ;;  %v822_v50 = vmov 0  }
 0x1c7   : > { %v1124_v23 = vpop.eup %762  ;;  %494 = vmatprep.mubr.bf16.mxu1 %v822_v50 }
 0x1c8   : > { %v378_v35 = vmul.f32 1.442695, %v352_v51  ;;  %402 = vadd.xlane.f32.xlu0 %v1124_v23 }
 0x1c9   : > { %v333_v54 = vpop.xlane.xlu1 %332 }
 0x1ca   : > { %770 = vpow2.f32 %v378_v35  ;;  %v353_v34 = vsub.f32 %v333_v54, %v1072_v55 }
 0x1cb   : > { %v1128_v40 = vpop.eup %764 }
 0x1cc   : > { %v380_v44 = vmul.f32 1.442695, %v353_v34  ;;  %404 = vadd.xlane.f32.xlu1 %v1128_v40 }
 0x1cd   : > { %v335_v60 = vpop.xlane.xlu0 %334 }
 0x1ce   : > { %772 = vpow2.f32 %v380_v44  ;;  %v354_v41 = vsub.f32 %v335_v60, %v1077_v59 }
 0x1cf   : > { %v1132_v63 = vpop.eup %766 }
 0x1d0   : > { %v382_v48 = vmul.f32 1.442695, %v354_v41  ;;  %406 = vadd.xlane.f32.xlu0 %v1132_v63 }
 0x1d1   : > { %v337_v52 = vpop.xlane.xlu1 %336 }
 0x1d2   : > { %774 = vpow2.f32 %v382_v48  ;;  %v355_v55 = vsub.f32 %v337_v52, %v1082_v3 }
 0x1d3   : > { %v1137_v8 = vpop.eup %768 }
 0x1d4   : > { %v384_v56 = vmul.f32 1.442695, %v355_v55  ;;  %408 = vadd.xlane.f32.xlu1 %v1137_v8 }
 0x1d5   : > { %v339_v58 = vpop.xlane.xlu0 %338 }
 0x1d6   : > { %776 = vpow2.f32 %v384_v56  ;;  %v356_v59 = vsub.f32 %v339_v58, %v1087_v14 }
 0x1d7   : > { %v1141_v21 = vpop.eup %770 }
 0x1d8   : > { %v386_v49 = vmul.f32 1.442695, %v356_v59  ;;  %410 = vadd.xlane.f32.xlu0 %v1141_v21 }
 0x1d9   : > { %v341_v62 = vpop.xlane.xlu1 %340 }
 0x1da   : > { %778 = vpow2.f32 %v386_v49  ;;  %v357_v28 = vsub.f32 %v341_v62, %v1092_v29 }
 0x1db   : > { %v1145_v13 = vpop.eup %772 }
 0x1dc   : > { %v388_v3 = vmul.f32 1.442695, %v357_v28  ;;  %412 = vadd.xlane.f32.xlu1 %v1145_v13 }
 0x1de   : > { %780 = vpow2.f32 %v388_v3 }
 0x1df   : > { %v1148_v51 = vpop.eup %774 }
 0x1e0   : > { %414 = vadd.xlane.f32.xlu0 %v1148_v51 }
 0x1e3   : > { %v1151_v14 = vpop.eup %776 }
 0x1e4   : > { %416 = vadd.xlane.f32.xlu1 %v1151_v14 }
 0x1e7   : > { %v1154_v35 = vpop.eup %778 }
 0x1e8   : > { %418 = vadd.xlane.f32.xlu0 %v1154_v35 }
 0x1eb   : > { %v1157_v54 = vpop.eup %780 }
 0x1ec   : > { %420 = vadd.xlane.f32.xlu1 %v1157_v54 }
 0x239   : > { %v391_v29 = vpop.xlane.xlu0 %390 }
 0x23a   : > { %782 = vrcp.f32 %v391_v29 }
 0x23d   : > { %v393_v34 = vpop.xlane.xlu1 %392 }
 0x23e   : > { %784 = vrcp.f32 %v393_v34 }
 0x241   : > { %v395_v44 = vpop.xlane.xlu0 %394 }
 0x242   : > { %786 = vrcp.f32 %v395_v44 }
 0x245   : > { %v397_v60 = vpop.xlane.xlu1 %396 }
 0x246   : > { %788 = vrcp.f32 %v397_v60 }
 0x247   : > { %v783_v41 = vpop.eup %782 }
 0x248   : > { %v423_v55 = vmul.f32 %v783_v41, %v1100_v22 }
 0x249   : > { %v399_v48 = vpop.xlane.xlu0 %398 }
 0x24a   : > { %790 = vrcp.f32 %v399_v48 }
 0x24b   : > { %v785_v52 = vpop.eup %784 }
 0x24c   : > { %v425_v56 = vmul.f32 %v785_v52, %v1104_v57 }
 0x24d   : > { %v401_v58 = vpop.xlane.xlu1 %400 }
 0x24e   : > { %792 = vrcp.f32 %v401_v58  ;;  %v454_v59 = vpack.c.bf16 %v425_v56, %v423_v55 }
 0x24f   : > { %v787_v49 = vpop.eup %786 }
 0x250   : > { %495 = vmatmul.mubr.bf16.vlgmr.msra.gmra.mxu1 %v454_v59  ;;  %v427_v3 = vmul.f32 %v787_v49, %v1108_v47 }
 0x251   : > { %v403_v62 = vpop.xlane.xlu0 %402  ;;  %504 = vmatprep.mubr.bf16.mxu1 %v822_v50 }
 0x252   : > { %794 = vrcp.f32 %v403_v62 }
 0x253   : > { %v789_v28 = vpop.eup %788 }
 0x254   : > { %v429_v29 = vmul.f32 %v789_v28, %v1112_v53 }
 0x255   : > { %v405_v34 = vpop.xlane.xlu1 %404 }
 0x256   : > { %796 = vrcp.f32 %v405_v34  ;;  %v455_v44 = vpack.c.bf16 %v429_v29, %v427_v3 }
 0x257   : > { %v791_v22 = vpop.eup %790 }
 0x258   : > { %505 = vmatmul.mubr.bf16.gmra.mxu1 %v455_v44  ;;  %v431_v41 = vmul.f32 %v791_v22, %v1116_v61 }
 0x259   : > { %v407_v57 = vpop.xlane.xlu0 %406  ;;  %514 = vmatprep.mubr.bf16.mxu1 %v822_v50 }
 0x25a   : > { %798 = vrcp.f32 %v407_v57 }
 0x25b   : > { %v793_v60 = vpop.eup %792 }
 0x25c   : > { %v433_v48 = vmul.f32 %v793_v60, %v1120_v7 }
 0x25d   : > { %v409_v52 = vpop.xlane.xlu1 %408 }
 0x25e   : > { %800 = vrcp.f32 %v409_v52  ;;  %v456_v55 = vpack.c.bf16 %v433_v48, %v431_v41 }
 0x25f   : > { %v795_v47 = vpop.eup %794 }
 0x260   : > { %515 = vmatmul.mubr.bf16.gmra.mxu1 %v456_v55  ;;  %v435_v58 = vmul.f32 %v795_v47, %v1124_v23 }
 0x261   : > { %v411_v53 = vpop.xlane.xlu0 %410  ;;  %524 = vmatprep.mubr.bf16.mxu1 %v822_v50 }
 0x262   : > { %802 = vrcp.f32 %v411_v53 }
 0x263   : > { %v797_v56 = vpop.eup %796 }
 0x264   : > { %v437_v59 = vmul.f32 %v797_v56, %v1128_v40 }
 0x265   : > { %v413_v49 = vpop.xlane.xlu1 %412 }
 0x266   : > { %804 = vrcp.f32 %v413_v49  ;;  %v457_v62 = vpack.c.bf16 %v437_v59, %v435_v58  ;;  %v1183_v59 = vstv %s575_s16 }
 0x267   : > { %v799_v61 = vpop.eup %798 }
 0x268   : > { %525 = vmatmul.mubr.bf16.gmra.mxu1 %v457_v62  ;;  %v439_v3 = vmul.f32 %v799_v61, %v1132_v63 }
 0x269   : > { %v415_v7 = vpop.xlane.xlu0 %414  ;;  %534 = vmatprep.mubr.bf16.mxu1 %v822_v50 }
 0x26a   : > { %806 = vrcp.f32 %v415_v7 }
 0x26b   : > { %v801_v28 = vpop.eup %800 }
 0x26c   : > { %v441_v29 = vmul.f32 %v801_v28, %v1137_v8 }
 0x26d   : > { %v417_v34 = vpop.xlane.xlu1 %416 }
 0x26e   : > { %808 = vrcp.f32 %v417_v34  ;;  %v458_v44 = vpack.c.bf16 %v441_v29, %v439_v3 }
 0x26f   : > { %v803_v23 = vpop.eup %802 }
 0x270   : > { %535 = vmatmul.mubr.bf16.gmra.mxu1 %v458_v44  ;;  %v443_v57 = vmul.f32 %v803_v23, %v1141_v21 }
 0x271   : > { %v419_v40 = vpop.xlane.xlu0 %418  ;;  %544 = vmatprep.mubr.bf16.mxu1 %v822_v50 }
 0x272   : > { %810 = vrcp.f32 %v419_v40 }
 0x273   : > { %v805_v22 = vpop.eup %804 }
 0x274   : > { %v445_v60 = vmul.f32 %v805_v22, %v1145_v13 }
 0x275   : > { %v421_v41 = vpop.xlane.xlu1 %420 }
 0x276   : > { %812 = vrcp.f32 %v421_v41  ;;  %v459_v48 = vpack.c.bf16 %v445_v60, %v443_v57 }
 0x277   : > { %v807_v63 = vpop.eup %806 }
 0x278   : > { %545 = vmatmul.mubr.bf16.gmra.mxu1 %v459_v48  ;;  %v447_v52 = vmul.f32 %v807_v63, %v1148_v51 }
 0x279   : > { %554 = vmatprep.mubr.bf16.mxu1 %v822_v50 }
 0x27b   : > { %v809_v8 = vpop.eup %808 }
 0x27c   : > { %v449_v55 = vmul.f32 %v809_v8, %v1151_v14 }
 0x27e   : > { %v460_v47 = vpack.c.bf16 %v449_v55, %v447_v52 }
 0x27f   : > { %v811_v53 = vpop.eup %810 }
 0x280   : > { %555 = vmatmul.mubr.bf16.gmra.mxu1 %v460_v47  ;;  %v451_v13 = vmul.f32 %v811_v53, %v1154_v35 }
 0x281   : > { %564 = vmatprep.mubr.bf16.mxu1 %v822_v50 }
 0x283   : > { %v813_v21 = vpop.eup %812 }
 0x284   : > { %v453_v56 = vmul.f32 %v813_v21, %v1157_v54 }
 0x286   : > { %v461_v58 = vpack.c.bf16 %v453_v56, %v451_v13 }
 0x288   : > { %565 = vmatmul.mubr.bf16.gmra.mxu1 %v461_v58 }
 0x310   : > { %v496_v49 = vpop.f32.mrf.mxu1 }
 0x311   : > { %v577_v51 = vmul.f32 %v1183_v59, %v496_v49 }
 0x312   : > { %v498_v50 = vpop.f32.mrf.mxu1 }
 0x313   : > { %v609_v14 = vadd.f32 %v577_v51, %v1000_v45  ;;  %v578_v35 = vmul.f32 %v1183_v59, %v498_v50 }
 0x314   : > { %v500_v54 = vpop.f32.mrf.mxu1 }
 0x315   : > { %641 = vst [vmem:[%s1191_s19] sm:$0xff] %v609_v14  ;;  %v610_v62 = vadd.f32 %v578_v35, %v929_v19  ;;  %v579_v61 = vmul.f32 %v1183_v59, %v500_v54 }
 0x316   : > { %v502_v7 = vpop.f32.mrf.mxu1 }
 0x317   : > { %642 = vst [vmem:[%s1191_s19 + $0x8] sm:$0xff] %v610_v62  ;;  %v611_v28 = vadd.f32 %v579_v61, %v1003_v46  ;;  %v580_v3 = vmul.f32 %v1183_v59, %v502_v7 }
 0x318   : > { %v506_v29 = vpop.f32.mrf.mxu1 }
 0x319   : > { %643 = vst [vmem:[%s1191_s19 + $0x10] sm:$0xff] %v611_v28  ;;  %v612_v45 = vadd.f32 %v580_v3, %v932_v20  ;;  %v581_v34 = vmul.f32 %v1183_v59, %v506_v29 }
 0x31a   : > { %v508_v44 = vpop.f32.mrf.mxu1 }
 0x31b   : > { %644 = vst [vmem:[%s1191_s19 + $0x18] sm:$0xff] %v612_v45  ;;  %v613_v19 = vadd.f32 %v581_v34, %v992_v42  ;;  %v582_v23 = vmul.f32 %v1183_v59, %v508_v44 }
 0x31c   : > { %v510_v40 = vpop.f32.mrf.mxu1 }
 0x31d   : > { %645 = vst [vmem:[%s1191_s19 + $0x20] sm:$0xff] %v613_v19  ;;  %v614_v46 = vadd.f32 %v582_v23, %v982_v38  ;;  %v583_v22 = vmul.f32 %v1183_v59, %v510_v40 }
 0x31e   : > { %v512_v57 = vpop.f32.mrf.mxu1 }
 0x31f   : > { %646 = vst [vmem:[%s1191_s19 + $0x28] sm:$0xff] %v614_v46  ;;  %v615_v20 = vadd.f32 %v583_v22, %v995_v43  ;;  %v584_v60 = vmul.f32 %v1183_v59, %v512_v57 }
 0x320   : > { %v516_v41 = vpop.f32.mrf.mxu1 }
 0x321   : > { %647 = vst [vmem:[%s1191_s19 + $0x30] sm:$0xff] %v615_v20  ;;  %v616_v42 = vadd.f32 %v584_v60, %v985_v39  ;;  %v585_v48 = vmul.f32 %v1183_v59, %v516_v41 }
 0x322   : > { %v518_v63 = vpop.f32.mrf.mxu1 }
 0x323   : > { %648 = vst [vmem:[%s1191_s19 + $0x38] sm:$0xff] %v616_v42  ;;  %v617_v38 = vadd.f32 %v585_v48, %v976_v36  ;;  %v586_v8 = vmul.f32 %v1183_v59, %v518_v63 }
 0x324   : > { %v520_v52 = vpop.f32.mrf.mxu1 }
 0x325   : > { %649 = vst [vmem:[%s1191_s19 + $0x40] sm:$0xff] %v617_v38  ;;  %v618_v43 = vadd.f32 %v586_v8, %v966_v32  ;;  %v587_v55 = vmul.f32 %v1183_v59, %v520_v52 }
 0x326   : > { %v522_v47 = vpop.f32.mrf.mxu1 }
 0x327   : > { %650 = vst [vmem:[%s1191_s19 + $0x48] sm:$0xff] %v618_v43  ;;  %v619_v39 = vadd.f32 %v587_v55, %v979_v37  ;;  %v588_v53 = vmul.f32 %v1183_v59, %v522_v47 }
 0x328   : > { %v526_v21 = vpop.f32.mrf.mxu1 }
 0x329   : > { %651 = vst [vmem:[%s1191_s19 + $0x50] sm:$0xff] %v619_v39  ;;  %v620_v36 = vadd.f32 %v588_v53, %v969_v33  ;;  %v589_v13 = vmul.f32 %v1183_v59, %v526_v21 }
 0x32a   : > { %v528_v56 = vpop.f32.mrf.mxu1 }
 0x32b   : > { %652 = vst [vmem:[%s1191_s19 + $0x58] sm:$0xff] %v620_v36  ;;  %v621_v32 = vadd.f32 %v589_v13, %v960_v30  ;;  %v590_v58 = vmul.f32 %v1183_v59, %v528_v56 }
 0x32c   : > { %v530_v49 = vpop.f32.mrf.mxu1 }
 0x32d   : > { %653 = vst [vmem:[%s1191_s19 + $0x60] sm:$0xff] %v621_v32  ;;  %v622_v37 = vadd.f32 %v590_v58, %v950_v26  ;;  %v591_v51 = vmul.f32 %v1183_v59, %v530_v49 }
 0x32e   : > { %v532_v50 = vpop.f32.mrf.mxu1 }
 0x32f   : > { %654 = vst [vmem:[%s1191_s19 + $0x68] sm:$0xff] %v622_v37  ;;  %v623_v33 = vadd.f32 %v591_v51, %v963_v31  ;;  %v592_v14 = vmul.f32 %v1183_v59, %v532_v50 }
 0x330   : > { %v536_v35 = vpop.f32.mrf.mxu1 }
 0x331   : > { %655 = vst [vmem:[%s1191_s19 + $0x70] sm:$0xff] %v623_v33  ;;  %v624_v30 = vadd.f32 %v592_v14, %v953_v27  ;;  %v593_v54 = vmul.f32 %v1183_v59, %v536_v35 }
 0x332   : > { %v538_v62 = vpop.f32.mrf.mxu1 }
 0x333   : > { %656 = vst [vmem:[%s1191_s19 + $0x78] sm:$0xff] %v624_v30  ;;  %v625_v26 = vadd.f32 %v593_v54, %v943_v24  ;;  %v594_v61 = vmul.f32 %v1183_v59, %v538_v62 }
 0x334   : > { %v540_v7 = vpop.f32.mrf.mxu1 }
 0x335   : > { %657 = vst [vmem:[%s1191_s19 + $0x80] sm:$0xff] %v625_v26  ;;  %v626_v31 = vadd.f32 %v594_v61, %v922_v17  ;;  %v595_v28 = vmul.f32 %v1183_v59, %v540_v7 }
 0x336   : > { %v542_v3 = vpop.f32.mrf.mxu1 }
 0x337   : > { %658 = vst [vmem:[%s1191_s19 + $0x88] sm:$0xff] %v626_v31  ;;  %v627_v27 = vadd.f32 %v595_v28, %v946_v25  ;;  %v596_v29 = vmul.f32 %v1183_v59, %v542_v3 }
 0x338   : > { %v546_v45 = vpop.f32.mrf.mxu1 }
 0x339   : > { %659 = vst [vmem:[%s1191_s19 + $0x90] sm:$0xff] %v627_v27  ;;  %v628_v24 = vadd.f32 %v596_v29, %v926_v18  ;;  %v597_v34 = vmul.f32 %v1183_v59, %v546_v45 }
 0x33a   : > { %v548_v44 = vpop.f32.mrf.mxu1 }
 0x33b   : > { %660 = vst [vmem:[%s1191_s19 + $0x98] sm:$0xff] %v628_v24  ;;  %v629_v17 = vadd.f32 %v597_v34, %v916_v15  ;;  %v598_v19 = vmul.f32 %v1183_v59, %v548_v44 }
 0x33c   : > { %v550_v23 = vpop.f32.mrf.mxu1 }
 0x33d   : > { %661 = vst [vmem:[%s1191_s19 + $0xa0] sm:$0xff] %v629_v17  ;;  %v630_v25 = vadd.f32 %v598_v19, %v899_v11  ;;  %v599_v40 = vmul.f32 %v1183_v59, %v550_v23 }
 0x33e   : > { %v552_v46 = vpop.f32.mrf.mxu1 }
 0x33f   : > { %662 = vst [vmem:[%s1191_s19 + $0xa8] sm:$0xff] %v630_v25  ;;  %v631_v18 = vadd.f32 %v599_v40, %v919_v16  ;;  %v600_v22 = vmul.f32 %v1183_v59, %v552_v46 }
 0x340   : > { %v556_v57 = vpop.f32.mrf.mxu1 }
 0x341   : > { %663 = vst [vmem:[%s1191_s19 + $0xb0] sm:$0xff] %v631_v18  ;;  %v632_v15 = vadd.f32 %v600_v22, %v902_v12  ;;  %v601_v20 = vmul.f32 %v1183_v59, %v556_v57 }
 0x342   : > { %v558_v60 = vpop.f32.mrf.mxu1 }
 0x343   : > { %664 = vst [vmem:[%s1191_s19 + $0xb8] sm:$0xff] %v632_v15  ;;  %v633_v11 = vadd.f32 %v601_v20, %v891_v9  ;;  %v602_v41 = vmul.f32 %v1183_v59, %v558_v60 }
 0x344   : > { %v560_v42 = vpop.f32.mrf.mxu1 }
 0x345   : > { %665 = vst [vmem:[%s1191_s19 + $0xc0] sm:$0xff] %v633_v11  ;;  %v634_v16 = vadd.f32 %v602_v41, %v876_v5  ;;  %v603_v48 = vmul.f32 %v1183_v59, %v560_v42 }
 0x346   : > { %v562_v63 = vpop.f32.mrf.mxu1 }
 0x347   : > { %666 = vst [vmem:[%s1191_s19 + $0xc8] sm:$0xff] %v634_v16  ;;  %v635_v12 = vadd.f32 %v603_v48, %v894_v10  ;;  %v604_v38 = vmul.f32 %v1183_v59, %v562_v63 }
 0x348   : > { %v566_v8 = vpop.f32.mrf.mxu1 }
 0x349   : > { %667 = vst [vmem:[%s1191_s19 + $0xd0] sm:$0xff] %v635_v12  ;;  %v636_v9 = vadd.f32 %v604_v38, %v879_v6  ;;  %v605_v52 = vmul.f32 %v1183_v59, %v566_v8 }
 0x34a   : > { %v568_v43 = vpop.f32.mrf.mxu1 }
 0x34b   : > { %668 = vst [vmem:[%s1191_s19 + $0xd8] sm:$0xff] %v636_v9  ;;  %v637_v5 = vadd.f32 %v605_v52, %v866_v2  ;;  %v606_v55 = vmul.f32 %v1183_v59, %v568_v43 }
 0x34c   : > { %v570_v47 = vpop.f32.mrf.mxu1 }
 0x34d   : > { %669 = vst [vmem:[%s1191_s19 + $0xe0] sm:$0xff] %v637_v5  ;;  %v638_v10 = vadd.f32 %v606_v55, %v860_v0  ;;  %v607_v39 = vmul.f32 %v1183_v59, %v570_v47 }
 0x34e   : > { %v572_v53 = vpop.f32.mrf.mxu1 }
 0x34f   : > { %670 = vst [vmem:[%s1191_s19 + $0xe8] sm:$0xff] %v638_v10  ;;  %v639_v21 = vadd.f32 %v607_v39, %v873_v4  ;;  %v608_v6 = vmul.f32 %v1183_v59, %v572_v53 }
 0x351   : > { %671 = vst [vmem:[%s1191_s19 + $0xf0] sm:$0xff] %v639_v21  ;;  %v640_v36 = vadd.f32 %v608_v6, %v863_v1 }
 0x353   : > { %672 = vst [vmem:[%s1191_s19 + $0xf8] sm:$0xff] %v640_v36 }
 0x354 PF: > { %s13_s11 = sadd.s32 1, %s820_s11  }
 0x355   : > { %p10_p4 = scmp.ge.s32.totalorder %s13_s11, 4  }
 0x357   :  { %12 = sbr.rel (!%p10_p4) target bundleno = 2 (0x2), region = 58 }

</bundles_post_ra>
